<compile_context>
chip_gen: v7x
topology: tpu7x:2x2x1
jax: 0.10.0
libtpu: 0.0.40
codegen_flags: <defaults>
</compile_context>

<pallas_src>
import jax
import jax.numpy as jnp
from jax.experimental import pallas as pl
from jax.experimental.pallas import tpu as pltpu


def _cdiv(a, b):
    return -(-a // b)


def _round_up(x, m):
    return _cdiv(x, m) * m


def _choose_seq_tile(seq, batch):
    """Largest seq tile (multiple of 8, <= 512) that still yields >= 4 grid
    steps when possible (v7x megacore + software pipelining at small batch)."""
    t = 512 if seq > 1024 else 256
    t = min(t, _round_up(seq, 8))
    while t > 8 and batch * _cdiv(seq, t) < 4:
        t = max(8, _round_up(t // 2, 8))
    return t


def _patch_embed_kernel(p_ref, w_ref, pos_ref, o_ref):
    """One grid step: one (seq-tile, batch) output block.

    p_ref   : (1, tn, Kp)  patches in compute dtype (cls / pad rows are zero)
    w_ref   : (Kp, Ep)     flattened conv weight, grid-invariant, 1-buffered
    pos_ref : (tn, Ep)     f32 fused table: pos_emb + conv bias (+ cls token)
    o_ref   : (1, tn, Ep)  output tile
    """
    acc = jnp.dot(p_ref[0], w_ref[...], preferred_element_type=jnp.float32)
    o_ref[0, :, :] = (acc + pos_ref[...]).astype(o_ref.dtype)


def patch_embedding(x, conv_w, conv_b, cls_tok, pos_emb, *, patch_size,
                    compute_dtype=jnp.bfloat16, out_dtype=None):
    """x: (B, C, H, W) NCHW.  Returns (B, num_patches + 1, E), cls row last.

    compute_dtype: dtype fed to the MXU (f32 accumulation); bf16 default.
    out_dtype:     output dtype; defaults to compute_dtype (halves the dominant
                   HBM write stream vs f32).  Pass jnp.float32 for the exact
                   escape hatch.
    """
    if out_dtype is None:
        out_dtype = compute_dtype

    B, C, H, W = x.shape
    P = patch_size
    E = conv_w.shape[0]
    hp, wp = H // P, W // P
    N = hp * wp
    K = C * P * P
    seq = N + 1

    # --- tiling / padding ----------------------------------------------------
    K_pad = _round_up(K, 128)          # lane-dense MXU contraction
    E_pad = _round_up(E, 128)          # lane-dense MXU output + dense stores
    tn = _choose_seq_tile(seq, B)      # sublane-dense (multiple of 8)
    n_tiles = _cdiv(seq, tn)
    seq_pad = n_tiles * tn

    # --- host glue (single fused chain; no concatenate) -----------------------
    # Patch extraction in (c, py, px) order, matching the flattened Conv2d
    # weight (E, C, P, P).  Cast to the compute dtype *before* the transpose so
    # the materialized patch tensor is half-width; one jnp.pad adds the zero
    # cls row, the seq padding and the K padding in one go.
    patches = x.astype(compute_dtype).reshape(B, C, hp, P, wp, P)
    patches = patches.transpose(0, 2, 4, 1, 3, 5).reshape(B, N, K)
    patches = jnp.pad(patches, ((0, 0), (0, seq_pad - N), (0, K_pad - K)))

    w_mat = conv_w.reshape(E, K).T                               # (K, E)
    w_mat = jnp.pad(w_mat, ((0, K_pad - K), (0, E_pad - E)))
    w_mat = w_mat.astype(compute_dtype)                          # (Kp, Ep)

    # Fuse conv bias (patch rows) and cls token (last valid row) into the f32
    # pos table; padded rows/cols are zero and sliced away at the end.
    pos_fused = pos_emb.astype(jnp.float32)
    pos_fused = pos_fused.at[:N].add(conv_b.astype(jnp.float32)[None, :])
    pos_fused = pos_fused.at[N].add(cls_tok.reshape(E).astype(jnp.float32))
    pos_fused = jnp.pad(pos_fused, ((0, seq_pad - seq), (0, E_pad - E)))

    # --- VMEM budget from the actual per-step footprint -----------------------
    cd = jnp.dtype(compute_dtype).itemsize
    od = jnp.dtype(out_dtype).itemsize
    vmem_bytes = (2 * tn * K_pad * cd        # patches tile, double-buffered
                  + 2 * tn * E_pad * od      # output tile, double-buffered
                  + 1 * K_pad * E_pad * cd   # weight, Buffered(1), resident
                  + 2 * tn * E_pad * 4)      # f32 pos tile, double-buffered
    vmem_limit = int(min(64 * 1024 * 1024, max(4 * 1024 * 1024, 2 * vmem_bytes)))

    cost = pl.CostEstimate(
        flops=2 * B * seq_pad * K_pad * E_pad,
        transcendentals=0,
        bytes_accessed=(patches.size * cd + w_mat.size * cd
                        + pos_fused.size * 4 + B * seq_pad * E_pad * od),
    )

    out = pl.pallas_call(
        _patch_embed_kernel,
        out_shape=jax.ShapeDtypeStruct((B, seq_pad, E_pad), out_dtype),
        grid_spec=pltpu.PrefetchScalarGridSpec(
            num_scalar_prefetch=0,
            # seq-tiles outer, batch inner: pos tile's block index only changes
            # on the outer axis -> each pos tile is DMA'd exactly once.
            grid=(n_tiles, B),
            in_specs=[
                pl.BlockSpec((1, tn, K_pad), lambda n, b: (b, n, 0)),
                # Grid-invariant weight: resident, single VMEM buffer.
                pl.BlockSpec((K_pad, E_pad), lambda n, b: (0, 0),
                             pipeline_mode=pl.Buffered(1)),
                pl.BlockSpec((tn, E_pad), lambda n, b: (n, 0)),
            ],
            out_specs=pl.BlockSpec((1, tn, E_pad), lambda n, b: (b, n, 0)),
        ),
        compiler_params=pltpu.CompilerParams(
            dimension_semantics=("parallel", "parallel"),
            vmem_limit_bytes=vmem_limit),
        cost_estimate=cost,
    )(patches, w_mat, pos_fused)

    if (seq_pad, E_pad) != (seq, E):
        out = out[:, :seq, :E]
    return out


def reference(x, conv_w, conv_b, cls_tok, pos_emb, *, patch_size):
    """Pure-JAX f32 reference mimicking the PyTorch forward exactly."""
    B, C, H, W = x.shape
    E = conv_w.shape[0]
    y = jax.lax.conv_general_dilated(
        x, conv_w, window_strides=(patch_size, patch_size), padding="VALID",
        dimension_numbers=("NCHW", "OIHW", "NCHW"))
    y = y + conv_b.reshape(1, E, 1, 1)
    N = y.shape[2] * y.shape[3]
    out = y.reshape(B, E, N).transpose(0, 2, 1)                  # (B, N, E)
    cls = jnp.broadcast_to(cls_tok.reshape(1, 1, E), (B, 1, E))
    cout = jnp.concatenate([out, cls], axis=1)                   # (B, N+1, E)
    return cout + pos_emb[None, :, :]


if __name__ == "__main__":
    # Small shapes consistent with the module: B=2, C=4, img=16, patch=4, E=32
    B, C, IMG, P, E = 2, 4, 16, 4, 32
    N = (IMG // P) ** 2

    key = jax.random.PRNGKey(0)
    kx, kw, kb, kc, kp = jax.random.split(key, 5)

    x = jax.random.normal(kx, (B, C, IMG, IMG), dtype=jnp.float32)
    conv_w = jax.random.normal(kw, (E, C, P, P), dtype=jnp.float32) * 0.05
    conv_b = jax.random.normal(kb, (E,), dtype=jnp.float32) * 0.05
    cls_tok = jax.random.normal(kc, (1, E), dtype=jnp.float32)
    pos_emb = jax.random.normal(kp, (N + 1, E), dtype=jnp.float32)

    ref = reference(x, conv_w, conv_b, cls_tok, pos_emb, patch_size=P)

    # f32 compute + f32 output: tight check (validates indexing / fusion / pad).
    out_f32 = patch_embedding(x, conv_w, conv_b, cls_tok, pos_emb,
                              patch_size=P, compute_dtype=jnp.float32)
    out_f32 = jax.block_until_ready(out_f32)
    assert out_f32.shape == (B, N + 1, E), out_f32.shape
    assert jnp.allclose(out_f32, ref, atol=1e-4, rtol=1e-4), "f32 mismatch"

    # Default fast path: bf16 MXU inputs, f32 accumulation, bf16 output.
    out_bf16 = patch_embedding(x, conv_w, conv_b, cls_tok, pos_emb, patch_size=P)
    out_bf16 = jax.block_until_ready(out_bf16)
    assert out_bf16.shape == (B, N + 1, E), out_bf16.shape
    assert out_bf16.dtype == jnp.bfloat16, out_bf16.dtype
    assert jnp.allclose(out_bf16.astype(jnp.float32), ref,
                        atol=3e-2, rtol=3e-2), "bf16 mismatch"

    print("KERNEL_OK")
</pallas_src>

<mosaic_0001>
module attributes {stable_mosaic.version = 11 : i64} {
  func.func @_patch_embed_kernel(%arg0: i32, %arg1: i32, %arg2: memref<1x16x128xf32, #tpu.memory_space<vmem>>, %arg3: memref<128x128xf32, #tpu.memory_space<vmem>>, %arg4: memref<16x128xf32, #tpu.memory_space<vmem>>, %arg5: memref<1x16x128xf32, #tpu.memory_space<vmem>>) attributes {dimension_semantics = [#tpu.dimension_semantics<parallel>, #tpu.dimension_semantics<parallel>], iteration_bounds = array<i64: 2, 2>, scalar_prefetch = 0 : i64, scratch_operands = 0 : i64, tpu.core_type = #tpu.core_type<tc>, window_params = [{transform_indices = @transform_0, window_bounds = array<i64: 1, 16, 128>}, {pipeline_mode = #tpu.pipeline_mode<synchronous>, transform_indices = @transform_1, window_bounds = array<i64: 128, 128>}, {transform_indices = @transform_2, window_bounds = array<i64: 16, 128>}, {transform_indices = @transform_3, window_bounds = array<i64: 1, 16, 128>}]} {
    %c0 = arith.constant 0 : index
    %c0_0 = arith.constant 0 : index
    %c0_1 = arith.constant 0 : index
    %0 = vector.load %arg2[%c0, %c0_0, %c0_1] : memref<1x16x128xf32, #tpu.memory_space<vmem>>, vector<1x16x128xf32>
    %1 = vector.shape_cast %0 : vector<1x16x128xf32> to vector<16x128xf32>
    %c0_2 = arith.constant 0 : index
    %c0_3 = arith.constant 0 : index
    %2 = vector.load %arg3[%c0_2, %c0_3] : memref<128x128xf32, #tpu.memory_space<vmem>>, vector<128x128xf32>
    %cst = arith.constant dense<0.000000e+00> : vector<16x128xf32>
    %3 = tpu.matmul %1, %2, %cst {dimension_numbers = #tpu.dot_dimension_numbers<[1], [0], [0], [1], [0, 0, 1, 1], [], []>} : vector<16x128xf32>, vector<128x128xf32>, vector<16x128xf32> -> vector<16x128xf32>
    %c0_4 = arith.constant 0 : index
    %c0_5 = arith.constant 0 : index
    %4 = vector.load %arg4[%c0_4, %c0_5] : memref<16x128xf32, #tpu.memory_space<vmem>>, vector<16x128xf32>
    %5 = arith.addf %3, %4 : vector<16x128xf32>
    %c0_6 = arith.constant 0 : index
    %c0_7 = arith.constant 0 : index
    %c0_8 = arith.constant 0 : index
    %6 = vector.load %arg5[%c0_6, %c0_7, %c0_8] : memref<1x16x128xf32, #tpu.memory_space<vmem>>, vector<1x16x128xf32>
    %7 = vector.shape_cast %6 : vector<1x16x128xf32> to vector<16x128xf32>
    %8 = vector.shape_cast %5 : vector<16x128xf32> to vector<1x16x128xf32>
    tpu.vector_store %arg5[%c0_6, %c0_7, %c0_8], %8 {strides = array<i32>} : memref<1x16x128xf32, #tpu.memory_space<vmem>>, vector<1x16x128xf32>,
    return
  }
  func.func @transform_0(%arg0: i32, %arg1: i32) -> (i32, i32, i32) {
    %c0_i32 = arith.constant 0 : i32
    %c0_i32_0 = arith.constant 0 : i32
    return %arg1, %arg0, %c0_i32 : i32, i32, i32
  }
  func.func @transform_1(%arg0: i32, %arg1: i32) -> (i32, i32) {
    %c0_i32 = arith.constant 0 : i32
    %c0_i32_0 = arith.constant 0 : i32
    %c0_i32_1 = arith.constant 0 : i32
    return %c0_i32, %c0_i32_0 : i32, i32
  }
  func.func @transform_2(%arg0: i32, %arg1: i32) -> (i32, i32) {
    %c0_i32 = arith.constant 0 : i32
    %c0_i32_0 = arith.constant 0 : i32
    return %arg0, %c0_i32 : i32, i32
  }
  func.func @transform_3(%arg0: i32, %arg1: i32) -> (i32, i32, i32) {
    %c0_i32 = arith.constant 0 : i32
    %c0_i32_0 = arith.constant 0 : i32
    return %arg1, %arg0, %c0_i32 : i32, i32, i32
  }
}

</mosaic_0001>

<bundles_post_ra>
// kernel: tpu_custom_call.1
= control target key start
LH: loop header
LB: loop body
LE: loop exit
PB: predicated region body
PF: predicated region fallthrough
CT: control target
= control target key end

     0   :  { %s1343_s0 = inlined_call_operand.hbm [shape: f32[2,32,128], index: 0, kind: input, shape index: {}]   ;;  %s1344_s1 = inlined_call_operand.hbm [shape: f32[128,128], index: 1, kind: input, shape index: {}]   ;;  %s1345_s2 = inlined_call_operand.hbm [shape: f32[32,128], index: 2, kind: input, shape index: {}]   ;;  %s1346_s3 = inlined_call_operand.hbm [shape: f32[2,32,128], index: 3, kind: output, shape index: {}]  }
   0x1   :  { %1363 = sst [smem:[#allocation19_spill]] %s1343_s0 }
   0x2   :  { %1364 = sst [smem:[#allocation20_spill]] %s1346_s3 }
   0x3   :  { %8 = vsyncpa [#allocation3], 0 }
   0x4   :  { %10 = vsyncpa [#allocation3 + $0x1], 0 }
   0x5   :  { %11 = vsyncpa [#allocation6], 0 }
   0x6   :  { %12 = vsyncpa [#allocation4], 0 }
   0x7   :  { %14 = vsyncpa [#allocation4 + $0x1], 0  ;;  %s974_s12 = smov 0   ;;  %s976_s13 = smov 0  }
   0x8   :  { %s978_s14 = smov 0   ;;  %s980_s15 = smov 0  }
   0x9   :  { %s982_s16 = smov 0   ;;  %s984_s17 = smov 0  }
   0xa   :  { %s986_s18 = smov 0   ;;  %s988_s19 = smov 0  }
   0xb   :  { %s990_s20 = smov 0   ;;  %s992_s21 = smov 0  }
   0xc   :  { %s994_s22 = smov 0  }
   0xd LB: > { %1365 = sst [smem:[#allocation13_spill]] %s924_s17  ;;  %s29_s23 = sadd.s32 1, %s936_s20  ;;  %s944_s22 = sphi %s994_s22, %s20_s22   ;;  %s940_s21 = sphi %s992_s21, %s1408_s21   ;;  %s936_s20 = sphi %s990_s20, %s1400_s20   ;;  %s932_s19 = sphi %s988_s19, %s1407_s19   ;;  %s928_s18 = sphi %s986_s18, %s1399_s18   ;;  %s924_s17 = sphi %s984_s17, %s1398_s17   ;;  %s920_s16 = sphi %s982_s16, %s1406_s16   ;;  %s916_s15 = sphi %s980_s15, %s1405_s15   ;;  %s912_s14 = sphi %s978_s14, %s1404_s14   ;;  %s908_s13 = sphi %s976_s13, %s1403_s13   ;;  %s904_s12 = sphi %s974_s12, %s1402_s12  }
   0xe   : > { %1366 = sst [smem:[#allocation14_spill]] %s928_s18  ;;  %s32_s24 = sadd.s32 1, %s940_s21 }
   0xf   : > { %1367 = sst [smem:[#allocation15_spill]] %s936_s20  ;;  %p30_p0 = scmp.ge.s32.totalorder %s29_s23, 2 }
  0x10   : > { %s41_s25 = sadd.s32 1, %s924_s17  ;;  %p48_p1 = scmp.ne.s32.totalorder %s924_s17, %s920_s16 }
  0x11   : > { %p1351_p2 = scmp.eq.s32.totalorder %s944_s22, 0  ;;  %s1410_s23 = smov (%p30_p0, %s29_s23), 0 }
  0x12   : > { %1368 = sst [smem:[#allocation16_spill]] %s1410_s23  ;;  %s1412_s24 = smov (!%p30_p0, %s32_s24), %s940_s21 }
  0x13   : > { %s36_s26 = ssub.s32 %s936_s20, %s1410_s23  ;;  %p1045_p3 = por %p1351_p2, %p48_p1 }
  0x14   : > { %p34_p4 = scmp.ge.s32.totalorder %s1412_s24, 2  ;;  %p1350_p5 = scmp.lt.s32.totalorder %s944_s22, 4 }
  0x15   : > { %s166_s28 = sand.u32 1, %s944_s22   ;;  %s168_s4 = sand.u32 1, %s924_s17  }
  0x16   : > { %s1414_s24 = smov (%p34_p4, %s1412_s24), 0  ;;  %s500_s5 = sshll.u32 %s168_s4, 4 }
  0x17   : > { %1370 = sst [smem:[#allocation17_spill]] %s1414_s24  ;;  %s1055_s29 = ssub.s32 %s940_s21, %s1414_s24 }
  0x18   : > { %s38_s30 = sor.u32 %s1055_s29, %s36_s26  ;;  %s501_s6 = sshll.u32 %s940_s21, 1 }
  0x19   : > { %p39_p7 = scmp.eq.s32.totalorder %s38_s30, 0  ;;  %s502_s8 = sshll.u32 %s936_s20, 2 }
  0x1a   : > { %s176_s9 = sadd.s32 %s502_s8, %s501_s6  ;;  %s170_s10 = scalar_lea.vmem [#allocation2], %s500_s5 }
  0x1b   : > { %s1062_s7 = scalar_select %p39_p7, %s924_s17, %s41_s25  }
  0x1c   : > { %s179_s11 = sshll.u32 %s170_s10, 4  ;;  %s503_s23 = sshll.u32 %s176_s9, 7  ;;  %s1065_s11 = int_to_ptr.vmem [resolvable:$true] %s179_s11 }
  0x1d   : > { %1371 = sst [smem:[#allocation18_spill]] %s1062_s7  ;;  %s1372_s0 = sld [smem:[#allocation19_spill]] }
  0x1e   : > { %p1076_p8 = pnand %p1350_p5, %p1045_p3  ;;  %s1080_s26 = scalar_lea.sflag [#allocation3], %s166_s28 }
  0x20   : > { %p728_p10 = pneg %p1076_p8 }
  0x23   : > { %s1070_s18 = scalar_lea.hbm %s1372_s0, %s503_s23  ;;  %s731_s24 = scalar_lea.hbm %s1372_s0, 1024 }
  0x24   : > { %s726_s30 = scalar_lea.hbm %s1070_s18, 256  ;;  %p732_p13 = scmp.lt.u32.totalorder %s1070_s18, %s1372_s0 }
  0x25   : > { %p727_p9 = scmp.ne.s32.totalorder %s1070_s18, %s726_s30  ;;  %p733_p0 = scmp.lt.u32.totalorder %s731_s24, %s726_s30 }
  0x26   : > { %p735_p4 = scmp.lt.u32.totalorder %s726_s30, %s1070_s18 }
  0x27   : > { %p729_p11 = pnand %p728_p10, %p727_p9  ;;  %p734_p3 = por %p733_p0, %p732_p13 }
  0x29   : > { %p730_p12 = pneg %p729_p11  ;;  %p736_p7 = por %p735_p4, %p734_p3 }
  0x2b   : > { %p737_p5 = pnand %p736_p7, %p730_p12 }
  0x2d   : > { %740 = shalt.err (!%p737_p5)
}
  0x2e   : > { %s741_s28 = scalar_lea.vmem %s1065_s11, 256  ;;  %s946_s5 = smov [#allocation2]  }
  0x2f   : > { %p742_p9 = scmp.ne.s32.totalorder %s1065_s11, %s741_s28  ;;  %s746_s6 = sshll.u32 %s946_s5, 4  ;;  %s747_s6 = int_to_ptr.vmem [resolvable:$false] %s746_s6 }
  0x30   : > { %s748_s8 = scalar_lea.vmem %s747_s6, 512  ;;  %p749_p6 = scmp.lt.s32.totalorder %s1065_s11, %s747_s6 }
  0x31   : > { %p744_p11 = pnand %p742_p9, %p728_p10  ;;  %p750_p13 = scmp.lt.s32.totalorder %s748_s8, %s741_s28 }
  0x33   : > { %p745_p2 = pneg %p744_p11  ;;  %p751_p0 = por %p750_p13, %p749_p6 }
  0x35   : > { %p752_p3 = pnand %p751_p0, %p745_p2 }
  0x37   : > { %755 = shalt.err (!%p752_p3)
}
  0x38   : > { %s1352_s9 = smov 128   ;;  %s1354_s10 = smov 8  }
  0x39   : > { %621 = dma.hbm_to_vmem [thread:$0]  (!%p1076_p8), %s1070_s18, 256, %s1065_s11, %s1080_s26, %s1352_s9, %s1352_s9, %s1354_s10  }
  0x3a   : > { %s1112_s30 = sadd.s32 4294967295, %s944_s22   ;;  %s496_s3 = sadd.s32 4294967294, %s944_s22  }
  0x3b   : > { %p54_p2 = scmp.ne.s32.totalorder %s920_s16, %s916_s15  ;;  %p1356_p5 = scmp.eq.s32.totalorder %s1112_s30, 0 }
  0x3c   : > { %p101_p6 = scmp.ne.s32.totalorder %s908_s13, %s904_s12  ;;  %p127_p10 = scmp.eq.s32.totalorder %s1112_s30, 3 }
  0x3d   : > { %p133_p12 = scmp.eq.s32.totalorder %s496_s3, 3  ;;  %p1123_p8 = por %p1356_p5, %p54_p2 }
  0x3e   : > { %p1129_p4 = por %p101_p6, %p1356_p5  ;;  %p1136_p7 = por %p127_p10, %p48_p1 }
  0x3f   : > { %s1374_s18 = scalar_select %p1123_p8, 1, 0 }
  0x40   : > { %s1375_s11 = scalar_select %p1129_p4, 1, 0 }
  0x41   : > { %s1376_s12 = scalar_select %p1136_p7, 1, 0 }
  0x42   : > { %p1140_p9 = por %p133_p12, %p54_p2  ;;  %p497_p11 = scmp.ge.s32.totalorder %s944_s22, 1 }
  0x43   : > { %p140_p13 = scmp.lt.s32.totalorder %s944_s22, 5  ;;  %s949_s24 = smov [#allocation5]  }
  0x44   : > { %s1377_s25 = scalar_select %p1140_p9, 1, 0 }
  0x45   : > { %p1146_p0 = pnand %p497_p11, %p140_p13  ;;  %s152_s27 = sshll.u32 %s949_s24, 4  ;;  %s153_s27 = int_to_ptr.vmem [resolvable:$true] %s152_s27 }
  0x46   : > { %s88_s4 = sadd.s32 1, %s912_s14  ;;  %p95_p1 = scmp.ne.s32.totalorder %s912_s14, %s908_s13 }
  0x47   : > { %s1378_s23 = scalar_select %p1146_p0, 1, 0 }
  0x48   : > { %p614_p3 = pneg %p1146_p0  ;;  %s191_s5 = sand.u32 1, %s912_s14  }
  0x49   : > { %p1380_p2 = scmp.eq.s32.totalorder %s1055_s29, 0  ;;  %p1381_p10 = scmp.eq.s32.totalorder %s944_s22, 0 }
  0x4a   : > { %p1157_p6 = pnand %p614_p3, %p1356_p5  ;;  %s756_s9 = scalar_lea.hbm %s1344_s1, 2048 }
  0x4b   : > { %s1165_s6 = scalar_select %p1380_p2, %s912_s14, %s88_s4  }
  0x4c   : > { %p1169_p12 = por %p95_p1, %p1381_p10  ;;  %p757_p11 = scmp.ne.s32.totalorder %s1344_s1, %s756_s9 }
  0x4d   : > { %p758_p13 = pneg %p1157_p6  ;;  %p763_p2 = scmp.lt.u32.totalorder %s756_s9, %s1344_s1 }
  0x4e   : > { %s1382_s8 = scalar_select %p1169_p12, 1, 0 }
  0x4f   : > { %p759_p3 = pnand %p758_p13, %p757_p11 }
  0x51   : > { %p760_p5 = pneg %p759_p3 }
  0x53   : > { %p765_p1 = pnand %p763_p2, %p760_p5 }
  0x55   : > { %768 = shalt.err (!%p765_p1)
}
  0x56   : > { %s769_s20 = scalar_lea.vmem %s153_s27, 2048  ;;  %p777_p4 = scmp.lt.s32.totalorder %s153_s27, %s153_s27 }
  0x57   : > { %p770_p10 = scmp.ne.s32.totalorder %s153_s27, %s769_s20  ;;  %p778_p8 = scmp.lt.s32.totalorder %s769_s20, %s769_s20 }
  0x59   : > { %p772_p9 = pnand %p770_p10, %p758_p13  ;;  %p779_p0 = por %p778_p8, %p777_p4 }
  0x5b   : > { %p773_p7 = pneg %p772_p9 }
  0x5d   : > { %p780_p12 = pnand %p779_p0, %p773_p7 }
  0x5f   : > { %783 = shalt.err (!%p780_p12)
}
  0x60   : > { %s1383_s0 = smov 8   ;;  %s1384_s10 = smov 128  }
  0x61   : > { %617 = dma.hbm_to_vmem [thread:$0]  (!%p1157_p6), %s1344_s1, 2048, %s153_s27, [#allocation6], %s1384_s10, %s1384_s10, %s1383_s0  }
  0x62   : > { %s504_s9 = sshll.u32 %s191_s5, 4  ;;  %s518_s29 = sshll.u32 %s940_s21, 8 }
  0x63   : > { %s1196_s20 = scalar_lea.hbm %s1345_s2, %s518_s29  ;;  %s193_s28 = scalar_lea.vmem [#allocation7], %s504_s9 }
  0x64   : > { %s200_s17 = sshll.u32 %s193_s28, 4  ;;  %p1385_p5 = scmp.ne.s32.totalorder %s1382_s8, 0  ;;  %s1206_s17 = int_to_ptr.vmem [resolvable:$true] %s200_s17 }
  0x65   : > { %p1386_p8 = scmp.lt.s32.totalorder %s944_s22, 4  ;;  %s784_s27 = scalar_lea.hbm %s1196_s20, 256 }
  0x66   : > { %p785_p7 = scmp.ne.s32.totalorder %s1196_s20, %s784_s27  ;;  %s789_s8 = scalar_lea.hbm %s1345_s2, 512 }
  0x67   : > { %p1202_p4 = pnand %p1386_p8, %p1385_p5  ;;  %p790_p12 = scmp.lt.u32.totalorder %s1196_s20, %s1345_s2 }
  0x68   : > { %p791_p11 = scmp.lt.u32.totalorder %s789_s8, %s784_s27  ;;  %p793_p3 = scmp.lt.u32.totalorder %s784_s27, %s1196_s20 }
  0x69   : > { %p786_p9 = pneg %p1202_p4 }
  0x6a   : > { %p792_p13 = por %p791_p11, %p790_p12 }
  0x6b   : > { %p787_p0 = pnand %p786_p9, %p785_p7 }
  0x6c   : > { %p794_p2 = por %p793_p3, %p792_p13 }
  0x6d   : > { %p788_p6 = pneg %p787_p0 }
  0x6f   : > { %p795_p1 = pnand %p794_p2, %p788_p6 }
  0x71   : > { %798 = shalt.err (!%p795_p1)
}
  0x72   : > { %s799_s29 = scalar_lea.vmem %s1206_s17, 256  ;;  %s950_s4 = smov [#allocation7]  }
  0x73   : > { %p800_p10 = scmp.ne.s32.totalorder %s1206_s17, %s799_s29  ;;  %s804_s28 = sshll.u32 %s950_s4, 4  ;;  %s805_s28 = int_to_ptr.vmem [resolvable:$false] %s804_s28 }
  0x74   : > { %s806_s7 = scalar_lea.vmem %s805_s28, 512  ;;  %p807_p7 = scmp.lt.s32.totalorder %s1206_s17, %s805_s28 }
  0x75   : > { %p802_p5 = pnand %p800_p10, %p786_p9  ;;  %p808_p0 = scmp.lt.s32.totalorder %s806_s7, %s799_s29 }
  0x77   : > { %p803_p8 = pneg %p802_p5  ;;  %p809_p12 = por %p808_p0, %p807_p7 }
  0x79   : > { %p810_p11 = pnand %p809_p12, %p803_p8 }
  0x7b   : > { %813 = shalt.err (!%p810_p11)
}
  0x7c   : > { %624 = dma.hbm_to_vmem [thread:$0]  (!%p1202_p4), %s1196_s20, 256, %s1206_s17, %s1080_s26, %s1384_s10, %s1384_s10, %s1383_s0  }
  0x7d   : > { %p1388_p9 = scmp.ne.s32.totalorder %s1378_s23, 0 }
  0x7e   : > { %s214_s27 = sand.u32 (!%p1388_p9), 1, %s1112_s30   ;;  %s216_s5 = sand.u32 (!%p1388_p9), 1, %s920_s16  }
  0x7f   : > { %212 = sbr.rel (%p1388_p9) target bundleno = 407 (0x197), region = 32  ;;  %s1243_s8 = sshll.u32 (!%p1388_p9), %s216_s5, 4 }
  0x80   : > { %s215_s3 = scalar_lea.sflag (!%p1388_p9), [#allocation3], %s214_s27  ;;  %s218_s24 = scalar_lea.vmem (!%p1388_p9), [#allocation2], %s1243_s8 }
  0x81   : > { %p1389_p6 = scmp.ne.s32.totalorder (!%p1388_p9), %s1374_s18, 0 }
  0x86   : > { %887 = dma.done.wait (%p1389_p6), %s215_s3, 256  }
  0x87   : > { %889 = vsyncadd (%p1389_p6), %s215_s3, 4294967040  ;;  %p1390_p4 = scmp.eq.s32.totalorder %s1112_s30, 0 }
  0x89   : > { %891 = dma.done.wait (%p1390_p4), [#allocation6], 2048   ;;  %p1391_p13 = pmov %p1390_p4 }
  0x8a   : > { %s229_s17 = sand.u32 1, %s908_s13   ;;  %p1392_p3 = scmp.ne.s32.totalorder %s1375_s11, 0 }
  0x8b   : > { %893 = vsyncadd (%p1391_p13), [#allocation6], 4294965248  ;;  %s1255_s26 = sshll.u32 %s229_s17, 4 }
  0x8c   : > { %s231_s23 = scalar_lea.vmem [#allocation7], %s1255_s26 }
  0x8d   : > { %895 = dma.done.wait (%p1392_p3), %s215_s3, 256  }
  0x8e   : > { %897 = vsyncadd (%p1392_p3), %s215_s3, 4294967040  ;;  %v264_v0 = vld [vmem:[#allocation5] sm:$0xff]  ;;  %v265_v1 = vld [vmem:[#allocation5 + $0x8] sm:$0xff]  ;;  %s1393_s30 = sld [smem:[#allocation14_spill]]  ;;  %s513_s18 = sshll.u32 %s932_s19, 1 }
  0x8f   : > { %v266_v2 = vld [vmem:[#allocation5 + $0x10] sm:$0xff]  ;;  %v572_v3 = vpack.c.bf16 %v265_v1, %v264_v0  ;;  %v267_v4 = vld [vmem:[#allocation5 + $0x18] sm:$0xff]  ;;  %v268_v6 = vld [vmem:[#allocation5 + $0x20] sm:$0xff]  ;;  %s258_s10 = scalar_lea.vmem [#allocation8], %s1243_s8  ;;  %s1394_s4 = sld [smem:[#allocation20_spill]] }
  0x90   : > { %v576_v5 = vpack.c.bf16 %v267_v4, %v266_v2  ;;  %v269_v7 = vld [vmem:[#allocation5 + $0x28] sm:$0xff]  ;;  %v262_v9 = vld [vmem:[%s218_s24] sm:$0xff]  ;;  %v271_v11 = vld [vmem:[#allocation5 + $0x38] sm:$0xff]  ;;  %s375_s20 = sshll.u32 %s258_s10, 4  ;;  %s1282_s7 = scalar_lea.sflag [#allocation4], %s216_s5  ;;  %s1273_s20 = int_to_ptr.vmem [resolvable:$true] %s375_s20 }
  0x91   : > { %573 = vmatprep.subr.bf16.mxu0 %v572_v3  ;;  %v580_v8 = vpack.c.bf16 %v269_v7, %v268_v6  ;;  %v270_v10 = vld [vmem:[#allocation5 + $0x30] sm:$0xff]  ;;  %569 = vmatprep.mubr.f32.mxu0 %v262_v9  ;;  %v272_v13 = vld [vmem:[#allocation5 + $0x40] sm:$0xff]  ;;  %v273_v14 = vld [vmem:[#allocation5 + $0x48] sm:$0xff]  ;;  %s814_s27 = scalar_lea.vmem %s1273_s20, 256  ;;  %p1395_p1 = scmp.ne.s32.totalorder %s1376_s12, 0 }
  0x92   : > { %575 = vmatpush3.bf16.msra.mxu0 %v572_v3  ;;  %v584_v12 = vpack.c.bf16 %v271_v11, %v270_v10  ;;  %v588_v15 = vpack.c.bf16 %v273_v14, %v272_v13  ;;  %v274_v16 = vld [vmem:[#allocation5 + $0x50] sm:$0xff]  ;;  %v275_v17 = vld [vmem:[#allocation5 + $0x58] sm:$0xff]  ;;  %v276_v19 = vld [vmem:[#allocation5 + $0x60] sm:$0xff]  ;;  %p815_p2 = scmp.ne.s32.totalorder %s1273_s20, %s814_s27  ;;  %s951_s8 = smov [#allocation8]  }
  0x93   : > { %577 = vmatprep.subr.bf16.mxu0 %v576_v5  ;;  %v592_v18 = vpack.c.bf16 %v275_v17, %v274_v16  ;;  %v277_v20 = vld [vmem:[#allocation5 + $0x68] sm:$0xff]  ;;  %v278_v22 = vld [vmem:[#allocation5 + $0x70] sm:$0xff]  ;;  %v279_v23 = vld [vmem:[#allocation5 + $0x78] sm:$0xff]  ;;  %s818_s3 = sshll.u32 %s951_s8, 4  ;;  %s819_s3 = int_to_ptr.vmem [resolvable:$false] %s818_s3 }
  0x94   : > { %v596_v21 = vpack.c.bf16 %v277_v20, %v276_v19  ;;  %v600_v24 = vpack.c.bf16 %v279_v23, %v278_v22  ;;  %v263_v25 = vld [vmem:[%s218_s24 + $0x8] sm:$0xff]  ;;  %s514_s11 = sshll.u32 %s1393_s30, 2  ;;  %v280_v27 = vld [vmem:[%s231_s23] sm:$0xff]  ;;  %p816_p10 = pnand %p815_p2, %p1395_p1 }
  0x95   : > { %s372_s0 = sadd.s32 %s514_s11, %s513_s18  ;;  %v281_v26 = vld [vmem:[%s231_s23 + $0x8] sm:$0xff]  ;;  %s820_s24 = scalar_lea.vmem %s819_s3, 512 }
  0x96   : > { %579 = vmatpush3.bf16.msra.mxu0 %v576_v5  ;;  %s515_s9 = sshll.u32 %s372_s0, 7  ;;  %p817_p5 = pneg %p816_p10 }
  0x97   : > { %581 = vmatprep.subr.bf16.mxu0 %v580_v8  ;;  %s1278_s28 = scalar_lea.hbm %s1394_s4, %s515_s9  ;;  %p821_p8 = scmp.lt.s32.totalorder %s1273_s20, %s819_s3 }
  0x98   : > { %p822_p7 = scmp.lt.s32.totalorder %s820_s24, %s814_s27 }
  0x9a   : > { %583 = vmatpush3.bf16.msra.mxu0 %v580_v8  ;;  %p823_p0 = por %p822_p7, %p821_p8 }
  0x9b   : > { %585 = vmatprep.subr.bf16.mxu0 %v584_v12 }
  0x9c   : > { %p824_p12 = pnand %p823_p0, %p817_p5 }
  0x9e   : > { %587 = vmatpush3.bf16.msra.mxu0 %v584_v12 }
  0x9f   : > { %589 = vmatprep.subr.bf16.mxu0 %v588_v15 }
  0xa2   : > { %591 = vmatpush3.bf16.msra.mxu0 %v588_v15 }
  0xa3   : > { %593 = vmatprep.subr.bf16.mxu0 %v592_v18 }
  0xa6   : > { %595 = vmatpush3.bf16.msra.mxu0 %v592_v18 }
  0xa7   : > { %597 = vmatprep.subr.bf16.mxu0 %v596_v21 }
  0xaa   : > { %599 = vmatpush3.bf16.msra.mxu0 %v596_v21 }
  0xab   : > { %601 = vmatprep.subr.bf16.mxu0 %v600_v24 }
  0xae   : > { %603 = vmatpush3.bf16.msra.mxu0 %v600_v24 }
  0xb1   : > { %570 = vmatmul.mubr.f32.vlgmr.msra.gmra.mrb[0].mxu0 %v263_v25 }
 0x184   : > { %v571_v28 = vpop.f32.mrb[0].mxu0 }
 0x185   : > { %v354_v29 = vadd.f32 %v571_v28, %v281_v26  ;;  %v348_v30 = vpop.f32.mrb[1].mxu0 }
 0x186   : > { %v349_v31 = vadd.f32 %v348_v30, %v280_v27 }
 0x187   : > { %358 = vst [vmem:[%s258_s10 + $0x8] sm:$0xff] %v354_v29 }
 0x188   : > { %357 = vst [vmem:[%s258_s10] sm:$0xff] %v349_v31 }
 0x189   : > { %827 = shalt.err (!%p824_p12)
}
 0x18a   : > { %s828_s5 = scalar_lea.hbm %s1278_s28, 256  ;;  %s832_s23 = scalar_lea.hbm %s1394_s4, 1024 }
 0x18b   : > { %p829_p11 = scmp.ne.s32.totalorder %s1278_s28, %s828_s5  ;;  %p833_p4 = scmp.lt.u32.totalorder %s1278_s28, %s1394_s4 }
 0x18c   : > { %p834_p13 = scmp.lt.u32.totalorder %s832_s23, %s828_s5  ;;  %p836_p2 = scmp.lt.u32.totalorder %s828_s5, %s1278_s28 }
 0x18d   : > { %p830_p9 = pnand %p829_p11, %p1395_p1 }
 0x18e   : > { %p835_p3 = por %p834_p13, %p833_p4 }
 0x18f   : > { %p831_p6 = pneg %p830_p9 }
 0x190   : > { %p837_p10 = por %p836_p2, %p835_p3 }
 0x192   : > { %p838_p5 = pnand %p837_p10, %p831_p6 }
 0x194   : > { %841 = shalt.err (!%p838_p5)
}
 0x195   : > { %s952_s11 = smov 128   ;;  %s953_s0 = smov 8  }
 0x196   : > { %612 = dma.vmem_to_hbm [thread:$0]  (%p1395_p1), %s1273_s20, 256, %s1278_s28, %s1282_s7, %s952_s11, %s952_s11, %s953_s0  }
 0x197 PF: > { %p632_p8 = scmp.ge.s32.totalorder %s944_s22, 2  ;;  %s390_s10 = sand.u32 1, %s916_s15  }
 0x198   : > { %p1396_p7 = scmp.ne.s32.totalorder %s1377_s25, 0  ;;  %s391_s9 = scalar_lea.sflag [#allocation4], %s390_s10 }
 0x19a   : > { %p626_p0 = pnand %p632_p8, %p1396_p7 }
 0x19c   : > { %899 = dma.done.wait (!%p626_p0), %s391_s9, 256  }
 0x19d   : > { %901 = vsyncadd (!%p626_p0), %s391_s9, 4294967040  ;;  %s20_s22 = sadd.s32 1, %s944_s22   ;;  %s1397_s19 = sld [smem:[#allocation13_spill]] }
 0x19e   : > { %p17_p12 = scmp.ge.s32.totalorder %s20_s22, 6   ;;  %s1398_s17 = sld [smem:[#allocation18_spill]] }
 0x19f   : > { %s1399_s18 = sld [smem:[#allocation15_spill]]  ;;  %s1400_s20 = sld [smem:[#allocation16_spill]] }
 0x1a0   : > { %s1401_s29 = sld [smem:[#allocation17_spill]]  ;;  %s1402_s12 = smov %s908_s13 }
 0x1a1   : > { %s1403_s13 = smov %s912_s14  ;;  %s1404_s14 = smov %s1165_s6 }
 0x1a2   : > { %s1405_s15 = smov %s920_s16  ;;  %19 = sbr.rel (!%p17_p12) target bundleno = 13 (0xd), region = 92 }
 0x1a3   : > { %s1406_s16 = smov %s1397_s19  ;;  %s1407_s19 = smov %s940_s21 }
 0x1a6   : > { %s1408_s21 = smov %s1401_s29 }
 0x1a9   :  { %396 = vsyncpa [#allocation3], 1 }
 0x1aa   :  { %398 = vsyncpa [#allocation3 + $0x1], 1 }
 0x1ab   :  { %399 = vsyncpa [#allocation6], 1 }
 0x1ac   :  { %400 = vsyncpa [#allocation4], 1 }
 0x1ad   :  { %402 = vsyncpa [#allocation4 + $0x1], 1 }

</bundles_post_ra>
